<compile_context>
chip_gen: v6e
topology: v6e:2x2x1
jax: 0.10.0
libtpu: 0.0.40
codegen_flags: <defaults>
</compile_context>

<pallas_src>
import jax
import jax.numpy as jnp
from jax.experimental import pallas as pl
from jax.experimental.pallas import tpu as pltpu


def attention_kernel(dec_ref, enc_ref, ctx_ref, w_ref):
    """One batch tile: scores (MXU) -> softmax (VPU/EUP) -> context (MXU).

    dec_ref: (TB, 1, H) VMEM, native dtype (decoder hidden, q-length 1)
    enc_ref: (TB, S, H) VMEM, native dtype (never upcast as a whole block)
    ctx_ref: (TB, 1, H) out
    w_ref:   (TB, 1, S) out
    """
    enc = enc_ref[...]                                    # (TB, S, H) native dtype
    dec = dec_ref[...].astype(enc.dtype)                  # (TB, 1, H)

    # scores[b, 0, s] = <dec[b, 0, :], enc[b, s, :]> — batched MXU contraction,
    # f32 accumulation (same pattern as flash-attention's 'bqd,bkd->bqk').
    scores = jnp.einsum(
        "bqh,bsh->bqs", dec, enc, preferred_element_type=jnp.float32
    )                                                     # (TB, 1, S) f32

    # Numerically stable softmax over the sequence axis (torch dim=1).
    m = jnp.max(scores, axis=-1, keepdims=True)           # (TB, 1, 1)
    e = jnp.exp(scores - m)                               # (TB, 1, S)
    denom = jnp.sum(e, axis=-1, keepdims=True)            # (TB, 1, 1)
    inv = pl.reciprocal(denom, approx=False)              # EUP; exact for 1e-5 tol
    weights = e * inv                                     # (TB, 1, S) f32

    # context[b, 0, h] = sum_s weights[b, 0, s] * enc[b, s, h] — batched MXU
    # contraction (flash-attention's 'bqk,bkd->bqd'), no (TB,S,H) f32 temporary.
    context = jnp.einsum(
        "bqs,bsh->bqh", weights.astype(enc.dtype), enc,
        preferred_element_type=jnp.float32,
    )                                                     # (TB, 1, H) f32

    ctx_ref[...] = context.astype(ctx_ref.dtype)
    w_ref[...] = weights.astype(w_ref.dtype)


def _pick_batch_tile(B, S, H, dtype):
    """Batch tile: full extent for tiny B, else sized against a conservative VMEM
    budget (safe for v7x's 64 MiB physical / ~32 MiB scoped), multiple of 8 for
    sublane-friendly leading-dim layout, and >=2 grid steps when B allows so the
    'parallel' axis can feed both TensorCores."""
    if B <= 8:
        return B
    itemsize = jnp.dtype(dtype).itemsize
    budget = 8 * 1024 * 1024  # leaves headroom for f32 temps / double-buffering
    per_row = 2 * (S * H + 2 * H + 2 * S) * itemsize + 4 * (2 * S + 2 * H + 4)
    tb = max(8, min(B, budget // max(per_row, 1)))
    tb = max(8, (tb // 8) * 8)
    if B >= 16:
        half = max(8, ((B // 2) // 8) * 8)
        tb = min(tb, half)
    return min(tb, B)


def attention_forward(decoder_hidden, encoder_outputs, attn_w=None, attn_b=None, v=None):
    """decoder_hidden: (1, B, H); encoder_outputs: (B, S, H) -> (context, weights).

    attn_w/attn_b/v are module parameters unused by the torch forward pass;
    kept for interface fidelity only.
    """
    del attn_w, attn_b, v
    B, S, H = encoder_outputs.shape
    dtype = encoder_outputs.dtype

    # (1, B, H) -> (B, 1, H): batch leads, so trailing block dims stay full-extent.
    dec = jnp.transpose(decoder_hidden, (1, 0, 2))

    tb = _pick_batch_tile(B, S, H, dtype)
    grid = (pl.cdiv(B, tb),)

    ctx3, w3 = pl.pallas_call(
        attention_kernel,
        out_shape=(
            jax.ShapeDtypeStruct((B, 1, H), dtype),
            jax.ShapeDtypeStruct((B, 1, S), dtype),
        ),
        grid_spec=pltpu.PrefetchScalarGridSpec(
            num_scalar_prefetch=0,
            grid=grid,
            in_specs=[
                # Only the (leading) batch axis is tiled; S and H are full-extent
                # blocks, so the (8,128) last-two-dims rule is always satisfied.
                pl.BlockSpec((tb, 1, H), lambda i: (i, 0, 0)),
                pl.BlockSpec((tb, S, H), lambda i: (i, 0, 0)),
            ],
            out_specs=[
                pl.BlockSpec((tb, 1, H), lambda i: (i, 0, 0)),
                pl.BlockSpec((tb, 1, S), lambda i: (i, 0, 0)),
            ],
        ),
        compiler_params=pltpu.CompilerParams(
            dimension_semantics=("parallel",),
        ),
    )(dec, encoder_outputs)

    return ctx3.reshape(B, H), w3.reshape(B, S)


def _reference(decoder_hidden, encoder_outputs):
    dec = decoder_hidden[0]                                   # (B, H)
    scores = jnp.einsum("bsh,bh->bs", encoder_outputs, dec)   # (B, S)
    w = jax.nn.softmax(scores, axis=1)
    ctx = jnp.sum(w[:, :, None] * encoder_outputs, axis=1)    # (B, H)
    return ctx, w


if __name__ == "__main__":
    B, S, H = 2, 8, 32

    key = jax.random.PRNGKey(0)
    k1, k2, k3, k4 = jax.random.split(key, 4)

    # Deterministic parameter init (shapes from __init__); unused in forward.
    attn_w = jax.random.normal(k3, (H, H), jnp.float32) * 0.02   # nn.Linear weight
    attn_b = jnp.zeros((H,), jnp.float32)                        # nn.Linear bias
    v = jax.random.uniform(k4, (H,), jnp.float32)                # nn.Parameter

    decoder_hidden = jax.random.normal(k1, (1, B, H), jnp.float32)
    encoder_outputs = jax.random.normal(k2, (B, S, H), jnp.float32)

    ctx, weights = attention_forward(decoder_hidden, encoder_outputs,
                                     attn_w, attn_b, v)
    jax.block_until_ready((ctx, weights))

    ctx_ref, w_ref = _reference(decoder_hidden, encoder_outputs)
    assert ctx.shape == (B, H) and weights.shape == (B, S)
    assert jnp.allclose(ctx, ctx_ref, atol=1e-5, rtol=1e-5)
    assert jnp.allclose(weights, w_ref, atol=1e-5, rtol=1e-5)

    print("KERNEL_OK")
</pallas_src>

<mosaic_0001>
module attributes {stable_mosaic.version = 11 : i64} {
  func.func @attention_kernel(%arg0: i32, %arg1: memref<2x1x32xf32, #tpu.memory_space<vmem>>, %arg2: memref<2x8x32xf32, #tpu.memory_space<vmem>>, %arg3: memref<2x1x32xf32, #tpu.memory_space<vmem>>, %arg4: memref<2x1x8xf32, #tpu.memory_space<vmem>>) attributes {dimension_semantics = [#tpu.dimension_semantics<parallel>], iteration_bounds = array<i64: 1>, scalar_prefetch = 0 : i64, scratch_operands = 0 : i64, tpu.core_type = #tpu.core_type<tc>, window_params = [{transform_indices = @transform_0, window_bounds = array<i64: 2, 1, 32>}, {transform_indices = @transform_1, window_bounds = array<i64: 2, 8, 32>}, {transform_indices = @transform_2, window_bounds = array<i64: 2, 1, 32>}, {transform_indices = @transform_3, window_bounds = array<i64: 2, 1, 8>}]} {
    %c0 = arith.constant 0 : index
    %c0_0 = arith.constant 0 : index
    %c0_1 = arith.constant 0 : index
    %0 = vector.load %arg2[%c0, %c0_0, %c0_1] : memref<2x8x32xf32, #tpu.memory_space<vmem>>, vector<2x8x32xf32>
    %c0_2 = arith.constant 0 : index
    %c0_3 = arith.constant 0 : index
    %c0_4 = arith.constant 0 : index
    %1 = vector.load %arg1[%c0_2, %c0_3, %c0_4] : memref<2x1x32xf32, #tpu.memory_space<vmem>>, vector<2x1x32xf32>
    "tpu.trace_start"() <{level = 10 : i32, message = "bqh,bsh->bqs"}> : () -> ()
    %cst = arith.constant dense<0.000000e+00> : vector<2x1x8xf32>
    %2 = tpu.matmul %1, %0, %cst {dimension_numbers = #tpu.dot_dimension_numbers<[2], [2], [1], [1], [0, 0, 0, 1, 1, 1], [0], [0]>} : vector<2x1x32xf32>, vector<2x8x32xf32>, vector<2x1x8xf32> -> vector<2x1x8xf32>
    "tpu.trace_stop"() : () -> ()
    %cst_5 = arith.constant dense<0xFF800000> : vector<2x1xf32>
    %3 = vector.multi_reduction <maximumf>, %2, %cst_5 [2] : vector<2x1x8xf32> to vector<2x1xf32>
    %4 = vector.shape_cast %3 : vector<2x1xf32> to vector<2x1x1xf32>
    %5 = vector.broadcast %4 : vector<2x1x1xf32> to vector<2x1x8xf32>
    %6 = arith.subf %2, %5 : vector<2x1x8xf32>
    %7 = math.exp %6 : vector<2x1x8xf32>
    %cst_6 = arith.constant dense<0.000000e+00> : vector<2x1xf32>
    %8 = vector.multi_reduction <add>, %7, %cst_6 [2] : vector<2x1x8xf32> to vector<2x1xf32>
    %9 = vector.shape_cast %8 : vector<2x1xf32> to vector<2x1x1xf32>
    %10 = tpu.reciprocal %9 : vector<2x1x1xf32> -> vector<2x1x1xf32>
    %11 = vector.broadcast %10 : vector<2x1x1xf32> to vector<2x1x8xf32>
    %12 = arith.mulf %7, %11 : vector<2x1x8xf32>
    "tpu.trace_start"() <{level = 10 : i32, message = "bqs,bsh->bqh"}> : () -> ()
    %cst_7 = arith.constant dense<0.000000e+00> : vector<2x1x32xf32>
    %13 = tpu.matmul %12, %0, %cst_7 {dimension_numbers = #tpu.dot_dimension_numbers<[2], [1], [1], [2], [0, 0, 0, 1, 1, 2], [0], [0]>} : vector<2x1x8xf32>, vector<2x8x32xf32>, vector<2x1x32xf32> -> vector<2x1x32xf32>
    "tpu.trace_stop"() : () -> ()
    %c0_8 = arith.constant 0 : index
    %c0_9 = arith.constant 0 : index
    %c0_10 = arith.constant 0 : index
    %14 = vector.load %arg3[%c0_8, %c0_9, %c0_10] : memref<2x1x32xf32, #tpu.memory_space<vmem>>, vector<2x1x32xf32>
    tpu.vector_store %arg3[%c0_8, %c0_9, %c0_10], %13 {strides = array<i32>} : memref<2x1x32xf32, #tpu.memory_space<vmem>>, vector<2x1x32xf32>,
    %c0_11 = arith.constant 0 : index
    %c0_12 = arith.constant 0 : index
    %c0_13 = arith.constant 0 : index
    %15 = vector.load %arg4[%c0_11, %c0_12, %c0_13] : memref<2x1x8xf32, #tpu.memory_space<vmem>>, vector<2x1x8xf32>
    tpu.vector_store %arg4[%c0_11, %c0_12, %c0_13], %12 {strides = array<i32>} : memref<2x1x8xf32, #tpu.memory_space<vmem>>, vector<2x1x8xf32>,
    return
  }
  func.func @transform_0(%arg0: i32) -> (i32, i32, i32) {
    %c0_i32 = arith.constant 0 : i32
    %c0_i32_0 = arith.constant 0 : i32
    %c0_i32_1 = arith.constant 0 : i32
    return %arg0, %c0_i32, %c0_i32_0 : i32, i32, i32
  }
  func.func @transform_1(%arg0: i32) -> (i32, i32, i32) {
    %c0_i32 = arith.constant 0 : i32
    %c0_i32_0 = arith.constant 0 : i32
    %c0_i32_1 = arith.constant 0 : i32
    return %arg0, %c0_i32, %c0_i32_0 : i32, i32, i32
  }
  func.func @transform_2(%arg0: i32) -> (i32, i32, i32) {
    %c0_i32 = arith.constant 0 : i32
    %c0_i32_0 = arith.constant 0 : i32
    %c0_i32_1 = arith.constant 0 : i32
    return %arg0, %c0_i32, %c0_i32_0 : i32, i32, i32
  }
  func.func @transform_3(%arg0: i32) -> (i32, i32, i32) {
    %c0_i32 = arith.constant 0 : i32
    %c0_i32_0 = arith.constant 0 : i32
    %c0_i32_1 = arith.constant 0 : i32
    return %arg0, %c0_i32, %c0_i32_0 : i32, i32, i32
  }
}

</mosaic_0001>

<bundles_post_ra>
// kernel: tpu_custom_call.1
= control target key start
LH: loop header
LB: loop body
LE: loop exit
PB: predicated region body
PF: predicated region fallthrough
CT: control target
= control target key end

     0   :  { %9 = vsyncpa [#allocation3], 0  ;;  %s610_s0 = inlined_call_operand.hbm [shape: f32[2,1,32], index: 0, kind: input, shape index: {}]   ;;  %s611_s1 = inlined_call_operand.hbm [shape: f32[2,8,32], index: 1, kind: input, shape index: {}]   ;;  %s612_s2 = inlined_call_operand.hbm [shape: f32[2,1,32], index: 2, kind: output, shape index: {0}]   ;;  %s613_s3 = inlined_call_operand.hbm [shape: f32[2,1,8], index: 3, kind: output, shape index: {1}]  }
   0x1   :  { %10 = vsyncpa [#allocation6], 0 }
   0x2   :  { %11 = vsyncpa [#allocation4], 0 }
   0x3   :  { %12 = vsyncpa [#allocation9], 0  ;;  %s549_s12 = smov [#allocation2]  }
   0x4   :  { %s18_s13 = sshll.u32 %s549_s12, 4  ;;  %s19_s13 = int_to_ptr.vmem [resolvable:$true] %s18_s13 }
   0x5   :  { %s469_s14 = scalar_lea.vmem %s19_s13, 32  ;;  %p474_p1 = scmp.lt.s32.totalorder %s19_s13, %s19_s13 }
   0x6   :  { %p470_p0 = scmp.ne.s32.totalorder %s19_s13, %s469_s14  ;;  %p475_p2 = scmp.lt.s32.totalorder %s469_s14, %s469_s14 }
   0x8   :  { %p476_p3 = por %p475_p2, %p474_p1 }
   0xa   :  { %p477_p4 = pnand %p476_p3, %p470_p0 }
   0xc   :  { %480 = shalt.err (!%p477_p4)
}
   0xd   :  { %s550_s15 = smov 16   ;;  %s551_s16 = smov 1  }
   0xe   :  { %24 = dma.hbm_to_vmem [thread:$0]  %s610_s0, 32, %s19_s13, [#allocation3], %s550_s15, %s550_s15, %s551_s16  }
   0xf   :  { %s552_s19 = smov [#allocation5]  }
  0x10   :  { %s30_s20 = sshll.u32 %s552_s19, 4  ;;  %s31_s20 = int_to_ptr.vmem [resolvable:$true] %s30_s20 }
  0x11   :  { %s489_s21 = scalar_lea.vmem %s31_s20, 256  ;;  %p494_p6 = scmp.lt.s32.totalorder %s31_s20, %s31_s20 }
  0x12   :  { %p490_p5 = scmp.ne.s32.totalorder %s31_s20, %s489_s21  ;;  %p495_p7 = scmp.lt.s32.totalorder %s489_s21, %s489_s21 }
  0x14   :  { %p496_p8 = por %p495_p7, %p494_p6 }
  0x16   :  { %p497_p9 = pnand %p496_p8, %p490_p5 }
  0x18   :  { %500 = shalt.err (!%p497_p9)
}
  0x19   :  { %s553_s22 = smov 128   ;;  %s554_s23 = smov 8  }
  0x1a   :  { %36 = dma.hbm_to_vmem [thread:$0]  %s611_s1, 256, %s31_s20, [#allocation6], %s553_s22, %s553_s22, %s554_s23  }
  0x1b   :  { %541 = dma.done.wait [#allocation3], 32  }
  0x1c   :  { %542 = vsyncadd [#allocation3], 4294967264 }
  0x1d   :  { %543 = dma.done.wait [#allocation6], 256  }
  0x1e   :  { %544 = vsyncadd [#allocation6], 4294967040  ;;  %v555_v0 = vmov 0.0   ;;  %vm556_vm0 = vmmov 0   ;;  %vm47_vm1 = vcmask 261120   ;;  %v43_v1 = vld [vmem:[#allocation5] sm:$0xff] }
  0x1f   :  { %423 = vmatprep.subr.mxu0 %v555_v0  ;;  %428 = vmatprep.subr.mxu1 %v555_v0  ;;  %v44_v2 = vld [vmem:[#allocation5 + $0x8] sm:$0xff]  ;;  %v45_v3 = vld [vmem:[#allocation2] sm:$0x1]  ;;  %v46_v4 = vld [vmem:[#allocation2 + $0x1] sm:$0x1]  ;;  %vm200_vm2 = vcmask 57344  }
  0x20   :  { %425 = vmatprep.mubr.msk.f32.mxu0 %vm556_vm0, %v555_v0  ;;  %430 = vmatprep.mubr.msk.f32.mxu1 %vm556_vm0, %v555_v0  ;;  %vm223_vm3 = vcmask 64512   ;;  %s557_s0 = smov [#allocation8]  }
  0x21   :  { %424 = vmatpush3.xpose.msk.msra.mxu0 %vm47_vm1, %v43_v1  ;;  %429 = vmatpush3.xpose.msk.msra.mxu1 %vm47_vm1, %v44_v2  ;;  %s392_s1 = sshll.u32 %s557_s0, 4  ;;  %s393_s1 = int_to_ptr.vmem [resolvable:$true] %s392_s1 }
  0x22   :  { %433 = vmatprep.subr.mxu0 %v555_v0  ;;  %438 = vmatprep.subr.mxu1 %v555_v0  ;;  %s501_s26 = scalar_lea.vmem %s393_s1, 32  ;;  %p506_p11 = scmp.lt.s32.totalorder %s393_s1, %s393_s1 }
  0x23   :  { %p502_p10 = scmp.ne.s32.totalorder %s393_s1, %s501_s26  ;;  %p507_p12 = scmp.lt.s32.totalorder %s501_s26, %s501_s26 }
  0x24   :  { %426 = vmatmul.mubr.msk.f32.vlgmr.msra.gmra.mxu0 %vm47_vm1, %v45_v3  ;;  %431 = vmatmul.mubr.msk.f32.vlgmr.msra.gmra.mxu1 %vm47_vm1, %v46_v4 }
  0x25   :  { %434 = vmatpush3.msra.mxu0 %v43_v1  ;;  %435 = vmatprep.mubr.msk.f32.mxu0 %vm556_vm0, %v555_v0  ;;  %p508_p13 = por %p507_p12, %p506_p11 }
  0x26   :  { %439 = vmatpush3.msra.mxu1 %v44_v2  ;;  %440 = vmatprep.mubr.msk.f32.mxu1 %vm556_vm0, %v555_v0 }
  0x27   :  { %p509_p0 = pnand %p508_p13, %p502_p10 }
  0xe4   :  { %v120_v5 = vpop.f32.mrf.mxu0  ;;  %v196_v6 = vpop.f32.mrf.mxu1 }
  0xe5   :  { %v201_v7 = vsel %vm200_vm2, %v120_v5, -inf  ;;  %v204_v10 = vsel %vm200_vm2, %v196_v6, -inf }
  0xe6   :  { %202 = vmax.xlane.f32.xlu0 %v201_v7  ;;  %v427_v8 = vpop.f32.mrf.mxu0  ;;  %v432_v9 = vpop.f32.mrf.mxu1 }
  0xea   :  { %205 = vmax.xlane.f32.xlu0 %v204_v10 }
 0x16f   :  { %v203_v11 = vpop.xlane.xlu0 %202 }
 0x170   :  { %v207_v12 = vsub.f32 %v120_v5, %v203_v11 }
 0x172   :  { %v209_v13 = vmul.f32 1.442695, %v207_v12 }
 0x173   :  { %v206_v14 = vpop.xlane.xlu0 %205 }
 0x174   :  { %453 = vpow2.f32 %v209_v13  ;;  %v208_v15 = vsub.f32 %v196_v6, %v206_v14 }
 0x176   :  { %v211_v16 = vmul.f32 1.442695, %v208_v15 }
 0x178   :  { %455 = vpow2.f32 %v211_v16 }
 0x181   :  { %v454_v17 = vpop.eup %453 }
 0x182   :  { %v213_v18 = vsel %vm200_vm2, %v454_v17, 0.0 }
 0x183   :  { %214 = vadd.xlane.f32.xlu1 %v213_v18 }
 0x185   :  { %v456_v19 = vpop.eup %455 }
 0x186   :  { %v216_v20 = vsel %vm200_vm2, %v456_v19, 0.0 }
 0x187   :  { %217 = vadd.xlane.f32.xlu1 %v216_v20 }
 0x20c   :  { %v215_v21 = vpop.xlane.xlu1 %214 }
 0x20d   :  { %457 = vrcp.f32 %v215_v21 }
 0x210   :  { %v218_v22 = vpop.xlane.xlu1 %217 }
 0x211   :  { %459 = vrcp.f32 %v218_v22 }
 0x21a   :  { %v458_v23 = vpop.eup %457 }
 0x21b   :  { %v221_v24 = vmul.f32 %v458_v23, %v454_v17 }
 0x21d   :  { %436 = vmatmul.mubr.msk.f32.vlgmr.msra.gmra.mxu0 %vm223_vm3, %v221_v24  ;;  %373 = vst.msk [vmem:[#allocation8] sm:$0x1] %vm200_vm2, %v221_v24 }
 0x21e   :  { %v460_v25 = vpop.eup %459 }
 0x21f   :  { %v222_v26 = vmul.f32 %v460_v25, %v456_v19 }
 0x221   :  { %441 = vmatmul.mubr.msk.f32.vlgmr.msra.gmra.mxu1 %vm223_vm3, %v222_v26  ;;  %374 = vst.msk [vmem:[#allocation8 + $0x1] sm:$0x1] %vm200_vm2, %v222_v26 }
 0x222   :  { %512 = shalt.err (!%p509_p0)
}
 0x223   :  { %398 = dma.vmem_to_hbm [thread:$0]  %s393_s1, 32, %s613_s3, [#allocation9], %s550_s15, %s550_s15, %s551_s16   ;;  %vm370_vm4 = vcmask 253952  }
 0x224   :  { %s558_s29 = smov [#allocation7]  }
 0x225   :  { %s380_s30 = sshll.u32 %s558_s29, 4  ;;  %s381_s30 = int_to_ptr.vmem [resolvable:$true] %s380_s30 }
 0x226   :  { %s521_s4 = scalar_lea.vmem %s381_s30, 32  ;;  %p526_p2 = scmp.lt.s32.totalorder %s381_s30, %s381_s30 }
 0x227   :  { %p522_p1 = scmp.ne.s32.totalorder %s381_s30, %s521_s4  ;;  %p527_p3 = scmp.lt.s32.totalorder %s521_s4, %s521_s4 }
 0x229   :  { %p528_p4 = por %p527_p3, %p526_p2 }
 0x22b   :  { %p529_p5 = pnand %p528_p4, %p522_p1 }
 0x2dd   :  { %v293_v27 = vpop.f32.mrf.mxu0 }
 0x2de   :  { %371 = vst.msk [vmem:[#allocation7] sm:$0x1] %vm370_vm4, %v293_v27 }
 0x2df   :  { %v437_v28 = vpop.f32.mrf.mxu0 }
 0x2e1   :  { %v366_v29 = vpop.f32.mrf.mxu1 }
 0x2e2   :  { %372 = vst.msk [vmem:[#allocation7 + $0x1] sm:$0x1] %vm370_vm4, %v366_v29 }
 0x2e3   :  { %v442_v30 = vpop.f32.mrf.mxu1 }
 0x2e4   :  { %532 = shalt.err (!%p529_p5)
}
 0x2e5   :  { %386 = dma.vmem_to_hbm [thread:$0]  %s381_s30, 32, %s612_s2, [#allocation4], %s550_s15, %s550_s15, %s551_s16  }
 0x2e6   :  { %545 = dma.done.wait [#allocation4], 32  }
 0x2e7   :  { %546 = vsyncadd [#allocation4], 4294967264 }
 0x2e8   :  { %547 = dma.done.wait [#allocation9], 32  }
 0x2e9   :  { %548 = vsyncadd [#allocation9], 4294967264 }
 0x2ea   :  { %405 = vsyncpa [#allocation3], 1 }
 0x2eb   :  { %406 = vsyncpa [#allocation6], 1 }
 0x2ec   :  { %407 = vsyncpa [#allocation4], 1 }
 0x2ed   :  { %408 = vsyncpa [#allocation9], 1 }

</bundles_post_ra>
